<compile_context>
chip_gen: v7x
topology: tpu7x:2x2x1
jax: 0.10.0
libtpu: 0.0.40
codegen_flags: <defaults>
</compile_context>

<pallas_src>
import functools
import math

import jax
import jax.numpy as jnp
from jax.experimental import pallas as pl
from jax.experimental.pallas import tpu as pltpu


def urgcn_kernel(edge_feat_ref, dst_ref, nodes_ref, counts_ref, wn_ref, wcat_ref,
                 out_ref, acc_ref, *, n_tile, d, active):
    e_step = pl.program_id(1)

    @pl.when(e_step == 0)
    def _init():
        acc_ref[...] = jnp.zeros_like(acc_ref)

    # ---- scatter-sum of this edge tile's features into the node accumulator ----
    dst = dst_ref[...]                                              # (1, E_TILE) i32
    row_base = pl.program_id(0) * n_tile
    node_ids = row_base + jax.lax.broadcasted_iota(
        jnp.int32, (n_tile, dst.shape[1]), 0)                       # (N_TILE, E_TILE)
    onehot = (node_ids == dst).astype(jnp.bfloat16)                 # exact in bf16
    # (N_TILE, E_TILE) @ (E_TILE, D) on the MXU, f32 accumulation.
    acc_ref[...] += jnp.dot(onehot, edge_feat_ref[...],
                            preferred_element_type=jnp.float32)

    # ---- finalize: mean, w_neighbor projection, self-loop, combine --------------
    @pl.when(e_step == pl.num_programs(1) - 1)
    def _finalize():
        counts = counts_ref[...]                                    # (N_TILE, 1) f32
        inv = pl.reciprocal(jnp.maximum(counts, 1.0), approx=True)  # EUP, near-free
        feat_mean = acc_ref[...] * inv                              # (N_TILE, D) f32

        # mean(x) @ Wn == mean(x @ Wn): one projection per node tile.
        msg_agg = jnp.dot(feat_mean.astype(jnp.bfloat16), wn_ref[...],
                          preferred_element_type=jnp.float32)       # (N_TILE, D)

        nodes = nodes_ref[...]                                      # (N_TILE, D) f32
        sl = jnp.dot(nodes.astype(jnp.bfloat16), wcat_ref[...],
                     preferred_element_type=jnp.float32)            # (N_TILE, 2D)
        is_dst = counts > 0.0
        sl_msg = jnp.where(is_dst, sl[:, :d], sl[:, d:])            # w_self vs w_self_evolve

        out = nodes + msg_agg + sl_msg
        if active:
            out = jnp.maximum(out, 0.0)
        out_ref[...] = out.astype(out_ref.dtype)


def urgcn_forward(nodes_embed, relation_embed, edges,
                  w_neighbor, w_self, w_self_evolve,
                  active=False, n_tile=64, e_tile=128):
    """Pallas URGCNLayer forward. nodes:(N,D) rel:(R,D) edges:(E,3) weights:(D,D)."""
    N, D = nodes_embed.shape
    E = edges.shape[0]
    src = edges[:, 0]
    eid = edges[:, 1]
    dst = edges[:, 2].astype(jnp.int32)

    # Data-dependent row gather stays in XLA (fused gather+add -> single bf16
    # (E, D) edge-feature stream instead of two f32 arrays).
    edge_feat = (nodes_embed[src] + relation_embed[eid]).astype(jnp.bfloat16)
    # In-degree counts (tiny) in the wrapper -> no in-kernel XLU reduce.
    counts = jax.ops.segment_sum(jnp.ones((E,), jnp.float32), dst, num_segments=N)

    # Pad N / E to tile multiples.  Padded edges get dst = -1 (matches no node);
    # padded node rows produce zeros and are sliced off.
    n_pad = (-N) % n_tile
    e_pad = (-E) % e_tile
    nodes_p = jnp.pad(nodes_embed, ((0, n_pad), (0, 0)))
    counts_p = jnp.pad(counts, (0, n_pad))[:, None]                     # (Np, 1)
    edge_feat_p = jnp.pad(edge_feat, ((0, e_pad), (0, 0)))              # (Ep, D) bf16
    dst_p = jnp.pad(dst, (0, e_pad), constant_values=-1)[None, :]       # (1, Ep) i32
    Np, Ep = N + n_pad, E + e_pad

    wn_bf = w_neighbor.astype(jnp.bfloat16)                             # (D, D)
    wcat_bf = jnp.concatenate([w_self, w_self_evolve], axis=1).astype(jnp.bfloat16)  # (D, 2D)

    grid = (Np // n_tile, Ep // e_tile)
    kernel = functools.partial(urgcn_kernel, n_tile=n_tile, d=D, active=active)

    out = pl.pallas_call(
        kernel,
        out_shape=jax.ShapeDtypeStruct((Np, D), nodes_embed.dtype),
        grid_spec=pltpu.PrefetchScalarGridSpec(
            num_scalar_prefetch=0,
            grid=grid,
            in_specs=[
                pl.BlockSpec((e_tile, D), lambda n, e: (e, 0)),     # edge features (bf16 stream)
                pl.BlockSpec((1, e_tile), lambda n, e: (0, e)),     # dst ids
                pl.BlockSpec((n_tile, D), lambda n, e: (n, 0)),     # nodes
                pl.BlockSpec((n_tile, 1), lambda n, e: (n, 0)),     # in-degree counts
                pl.BlockSpec((D, D), lambda n, e: (0, 0)),          # w_neighbor (bf16)
                pl.BlockSpec((D, 2 * D), lambda n, e: (0, 0)),      # [w_self | w_self_evolve] (bf16)
            ],
            out_specs=pl.BlockSpec((n_tile, D), lambda n, e: (n, 0)),
            scratch_shapes=[pltpu.VMEM((n_tile, D), jnp.float32)],
        ),
        compiler_params=pltpu.CompilerParams(
            dimension_semantics=("parallel", "arbitrary"),
            vmem_limit_bytes=32 * 1024 * 1024,   # tiles are small; safe on v5e/v6e/v7x
        ),
    )(edge_feat_p, dst_p, nodes_p, counts_p, wn_bf, wcat_bf)
    return out[:N]


def reference_forward(nodes, rels, edges, wn, ws, wse, active=False):
    """Pure-JAX f32 reference mirroring the PyTorch forward."""
    src, eid, dst = edges[:, 0], edges[:, 1], edges[:, 2]
    N = nodes.shape[0]
    msg = (nodes[src] + rels[eid]) @ wn
    agg_sum = jax.ops.segment_sum(msg, dst, num_segments=N)
    counts = jax.ops.segment_sum(jnp.ones_like(dst, jnp.float32), dst, num_segments=N)
    msg_agg = agg_sum / jnp.maximum(counts, 1.0)[:, None]
    is_dst = (counts > 0.0)[:, None]
    sl_msg = jnp.where(is_dst, nodes @ ws, nodes @ wse)
    out = nodes + msg_agg + sl_msg
    if active:
        out = jnp.maximum(out, 0.0)
    return out


def xavier_uniform(key, shape, gain):
    fan_in, fan_out = shape
    bound = gain * math.sqrt(6.0 / (fan_in + fan_out))
    return jax.random.uniform(key, shape, jnp.float32, -bound, bound)


if __name__ == "__main__":
    key = jax.random.PRNGKey(0)
    k_nodes, k_rel, k_src, k_eid, k_dst, k_wn, k_ws, k_wse = jax.random.split(key, 8)

    # Small but lane-friendly feature dim (D = 128); N / E deliberately NOT tile
    # multiples to exercise the padding path.  input_dim == output_dim == 128.
    num_node, num_edge, dim = 96, 200, 128

    nodes_embed = jax.random.normal(k_nodes, (num_node, dim), jnp.float32)
    relation_embed = jax.random.normal(k_rel, (num_edge, dim), jnp.float32)
    edges = jnp.stack([
        jax.random.randint(k_src, (num_edge,), 0, num_node),
        jax.random.randint(k_eid, (num_edge,), 0, num_edge),
        jax.random.randint(k_dst, (num_edge,), 0, num_node),
    ], axis=1).astype(jnp.int32)                      # (E, 3): (src, edge, dst)

    gain = math.sqrt(2.0)  # nn.init.calculate_gain('relu')
    w_neighbor = xavier_uniform(k_wn, (dim, dim), gain)
    w_self = xavier_uniform(k_ws, (dim, dim), gain)
    w_self_evolve = xavier_uniform(k_wse, (dim, dim), gain)

    out = urgcn_forward(nodes_embed, relation_embed, edges,
                        w_neighbor, w_self, w_self_evolve, active=False)
    out = jax.block_until_ready(out)

    ref = reference_forward(nodes_embed, relation_embed, edges,
                            w_neighbor, w_self, w_self_evolve, active=False)
    assert out.shape == (num_node, dim)
    # bf16 MXU operands + approx reciprocal -> looser tolerance than pure f32.
    assert jnp.allclose(out, ref, atol=1e-1, rtol=1e-1), (
        "mismatch vs reference, max abs err = %f" % float(jnp.max(jnp.abs(out - ref))))

    print("KERNEL_OK")
</pallas_src>

<mosaic_0001>
module attributes {stable_mosaic.version = 11 : i64} {
  func.func @urgcn_kernel(%arg0: i32, %arg1: i32, %arg2: memref<128x128xbf16, #tpu.memory_space<vmem>>, %arg3: memref<1x128xi32, #tpu.memory_space<vmem>>, %arg4: memref<64x128xf32, #tpu.memory_space<vmem>>, %arg5: memref<64x1xf32, #tpu.memory_space<vmem>>, %arg6: memref<128x128xbf16, #tpu.memory_space<vmem>>, %arg7: memref<128x256xbf16, #tpu.memory_space<vmem>>, %arg8: memref<64x128xf32, #tpu.memory_space<vmem>>, %arg9: memref<64x128xf32, #tpu.memory_space<vmem>>) attributes {dimension_semantics = [#tpu.dimension_semantics<parallel>, #tpu.dimension_semantics<arbitrary>], iteration_bounds = array<i64: 2, 2>, scalar_prefetch = 0 : i64, scratch_operands = 1 : i64, tpu.core_type = #tpu.core_type<tc>, window_params = [{transform_indices = @transform_0, window_bounds = array<i64: 128, 128>}, {transform_indices = @transform_1, window_bounds = array<i64: 1, 128>}, {transform_indices = @transform_2, window_bounds = array<i64: 64, 128>}, {transform_indices = @transform_3, window_bounds = array<i64: 64, 1>}, {pipeline_mode = #tpu.pipeline_mode<synchronous>, transform_indices = @transform_4, window_bounds = array<i64: 128, 128>}, {pipeline_mode = #tpu.pipeline_mode<synchronous>, transform_indices = @transform_5, window_bounds = array<i64: 128, 256>}, {transform_indices = @transform_6, window_bounds = array<i64: 64, 128>}]} {
    %c0_i32 = arith.constant 0 : i32
    %0 = arith.cmpi eq, %arg1, %c0_i32 : i32
    %1 = arith.extui %0 : i1 to i32
    %c0_i32_0 = arith.constant 0 : i32
    %2 = arith.cmpi ne, %1, %c0_i32_0 : i32
    scf.if %2 {
      %cst_9 = arith.constant 0.000000e+00 : f32
      %21 = vector.broadcast %cst_9 : f32 to vector<64x128xf32>
      %c0_10 = arith.constant 0 : index
      %c0_11 = arith.constant 0 : index
      %22 = vector.load %arg9[%c0_10, %c0_11] : memref<64x128xf32, #tpu.memory_space<vmem>>, vector<64x128xf32>
      tpu.vector_store %arg9[%c0_10, %c0_11], %21 {strides = array<i32>} : memref<64x128xf32, #tpu.memory_space<vmem>>, vector<64x128xf32>,
    } else {
    }
    %c0 = arith.constant 0 : index
    %c0_1 = arith.constant 0 : index
    %3 = vector.load %arg3[%c0, %c0_1] : memref<1x128xi32, #tpu.memory_space<vmem>>, vector<1x128xi32>
    %c64_i32 = arith.constant 64 : i32
    %4 = arith.muli %arg0, %c64_i32 : i32
    %5 = tpu.iota {dimensions = array<i32: 0>} : vector<64x128xi32>
    %6 = vector.broadcast %4 : i32 to vector<64x128xi32>
    %7 = arith.addi %6, %5 : vector<64x128xi32>
    %8 = vector.broadcast %3 : vector<1x128xi32> to vector<64x128xi32>
    %9 = arith.cmpi eq, %7, %8 : vector<64x128xi32>
    %10 = arith.extui %9 : vector<64x128xi1> to vector<64x128xi32>
    %11 = arith.sitofp %10 : vector<64x128xi32> to vector<64x128xf32>
    %12 = arith.truncf %11 : vector<64x128xf32> to vector<64x128xbf16>
    %c0_2 = arith.constant 0 : index
    %c0_3 = arith.constant 0 : index
    %13 = vector.load %arg9[%c0_2, %c0_3] : memref<64x128xf32, #tpu.memory_space<vmem>>, vector<64x128xf32>
    %c0_4 = arith.constant 0 : index
    %c0_5 = arith.constant 0 : index
    %14 = vector.load %arg2[%c0_4, %c0_5] : memref<128x128xbf16, #tpu.memory_space<vmem>>, vector<128x128xbf16>
    %cst = arith.constant dense<0.000000e+00> : vector<64x128xf32>
    %15 = tpu.matmul %12, %14, %cst {dimension_numbers = #tpu.dot_dimension_numbers<[1], [0], [0], [1], [0, 0, 1, 1], [], []>} : vector<64x128xbf16>, vector<128x128xbf16>, vector<64x128xf32> -> vector<64x128xf32>
    %16 = arith.addf %13, %15 : vector<64x128xf32>
    %c0_6 = arith.constant 0 : index
    %c0_7 = arith.constant 0 : index
    %17 = vector.load %arg9[%c0_6, %c0_7] : memref<64x128xf32, #tpu.memory_space<vmem>>, vector<64x128xf32>
    tpu.vector_store %arg9[%c0_6, %c0_7], %16 {strides = array<i32>} : memref<64x128xf32, #tpu.memory_space<vmem>>, vector<64x128xf32>,
    %c1_i32 = arith.constant 1 : i32
    %18 = arith.cmpi eq, %arg1, %c1_i32 : i32
    %19 = arith.extui %18 : i1 to i32
    %c0_i32_8 = arith.constant 0 : i32
    %20 = arith.cmpi ne, %19, %c0_i32_8 : i32
    scf.if %20 {
      %c0_9 = arith.constant 0 : index
      %c0_10 = arith.constant 0 : index
      %21 = vector.load %arg5[%c0_9, %c0_10] : memref<64x1xf32, #tpu.memory_space<vmem>>, vector<64x1xf32>
      %cst_11 = arith.constant 1.000000e+00 : f32
      %22 = vector.broadcast %cst_11 : f32 to vector<64x1xf32>
      %23 = arith.maximumf %21, %22 : vector<64x1xf32>
      %24 = tpu.reciprocal %23 {approx = true} : vector<64x1xf32> -> vector<64x1xf32>
      %c0_12 = arith.constant 0 : index
      %c0_13 = arith.constant 0 : index
      %25 = vector.load %arg9[%c0_12, %c0_13] : memref<64x128xf32, #tpu.memory_space<vmem>>, vector<64x128xf32>
      %26 = vector.broadcast %24 : vector<64x1xf32> to vector<64x128xf32>
      %27 = arith.mulf %25, %26 : vector<64x128xf32>
      %28 = arith.truncf %27 : vector<64x128xf32> to vector<64x128xbf16>
      %c0_14 = arith.constant 0 : index
      %c0_15 = arith.constant 0 : index
      %29 = vector.load %arg6[%c0_14, %c0_15] : memref<128x128xbf16, #tpu.memory_space<vmem>>, vector<128x128xbf16>
      %cst_16 = arith.constant dense<0.000000e+00> : vector<64x128xf32>
      %30 = tpu.matmul %28, %29, %cst_16 {dimension_numbers = #tpu.dot_dimension_numbers<[1], [0], [0], [1], [0, 0, 1, 1], [], []>} : vector<64x128xbf16>, vector<128x128xbf16>, vector<64x128xf32> -> vector<64x128xf32>
      %c0_17 = arith.constant 0 : index
      %c0_18 = arith.constant 0 : index
      %31 = vector.load %arg4[%c0_17, %c0_18] : memref<64x128xf32, #tpu.memory_space<vmem>>, vector<64x128xf32>
      %32 = arith.truncf %31 : vector<64x128xf32> to vector<64x128xbf16>
      %c0_19 = arith.constant 0 : index
      %c0_20 = arith.constant 0 : index
      %33 = vector.load %arg7[%c0_19, %c0_20] : memref<128x256xbf16, #tpu.memory_space<vmem>>, vector<128x256xbf16>
      %cst_21 = arith.constant dense<0.000000e+00> : vector<64x256xf32>
      %34 = tpu.matmul %32, %33, %cst_21 {dimension_numbers = #tpu.dot_dimension_numbers<[1], [0], [0], [1], [0, 0, 1, 1], [], []>} : vector<64x128xbf16>, vector<128x256xbf16>, vector<64x256xf32> -> vector<64x256xf32>
      %cst_22 = arith.constant 0.000000e+00 : f32
      %35 = vector.broadcast %cst_22 : f32 to vector<64x1xf32>
      %36 = arith.cmpf ogt, %21, %35 : vector<64x1xf32>
      %37 = vector.extract_strided_slice %34 {offsets = [0, 0], sizes = [64, 128], strides = [1, 1]} : vector<64x256xf32> to vector<64x128xf32>
      %38 = vector.extract_strided_slice %34 {offsets = [0, 128], sizes = [64, 128], strides = [1, 1]} : vector<64x256xf32> to vector<64x128xf32>
      %39 = vector.shape_cast %36 : vector<64x1xi1> to vector<64x1xi1>
      %40 = vector.broadcast %39 : vector<64x1xi1> to vector<64x128xi1>
      %41 = arith.select %40, %37, %38 : vector<64x128xi1>, vector<64x128xf32>
      %42 = arith.addf %31, %30 : vector<64x128xf32>
      %43 = arith.addf %42, %41 : vector<64x128xf32>
      %c0_23 = arith.constant 0 : index
      %c0_24 = arith.constant 0 : index
      %44 = vector.load %arg8[%c0_23, %c0_24] : memref<64x128xf32, #tpu.memory_space<vmem>>, vector<64x128xf32>
      tpu.vector_store %arg8[%c0_23, %c0_24], %43 {strides = array<i32>} : memref<64x128xf32, #tpu.memory_space<vmem>>, vector<64x128xf32>,
    } else {
    }
    return
  }
  func.func @transform_0(%arg0: i32, %arg1: i32) -> (i32, i32) {
    %c0_i32 = arith.constant 0 : i32
    %c0_i32_0 = arith.constant 0 : i32
    return %arg1, %c0_i32 : i32, i32
  }
  func.func @transform_1(%arg0: i32, %arg1: i32) -> (i32, i32) {
    %c0_i32 = arith.constant 0 : i32
    %c0_i32_0 = arith.constant 0 : i32
    return %c0_i32, %arg1 : i32, i32
  }
  func.func @transform_2(%arg0: i32, %arg1: i32) -> (i32, i32) {
    %c0_i32 = arith.constant 0 : i32
    %c0_i32_0 = arith.constant 0 : i32
    return %arg0, %c0_i32 : i32, i32
  }
  func.func @transform_3(%arg0: i32, %arg1: i32) -> (i32, i32) {
    %c0_i32 = arith.constant 0 : i32
    %c0_i32_0 = arith.constant 0 : i32
    return %arg0, %c0_i32 : i32, i32
  }
  func.func @transform_4(%arg0: i32, %arg1: i32) -> (i32, i32) {
    %c0_i32 = arith.constant 0 : i32
    %c0_i32_0 = arith.constant 0 : i32
    %c0_i32_1 = arith.constant 0 : i32
    return %c0_i32, %c0_i32_0 : i32, i32
  }
  func.func @transform_5(%arg0: i32, %arg1: i32) -> (i32, i32) {
    %c0_i32 = arith.constant 0 : i32
    %c0_i32_0 = arith.constant 0 : i32
    %c0_i32_1 = arith.constant 0 : i32
    return %c0_i32, %c0_i32_0 : i32, i32
  }
  func.func @transform_6(%arg0: i32, %arg1: i32) -> (i32, i32) {
    %c0_i32 = arith.constant 0 : i32
    %c0_i32_0 = arith.constant 0 : i32
    return %arg0, %c0_i32 : i32, i32
  }
}

</mosaic_0001>

<bundles_post_ra>
// kernel: tpu_custom_call.1
= control target key start
LH: loop header
LB: loop body
LE: loop exit
PB: predicated region body
PF: predicated region fallthrough
CT: control target
= control target key end

     0   :  { %s2205_s0 = inlined_call_operand.vmem [shape: bf16[256,128], index: 0, kind: input, shape index: {}]   ;;  %s2206_s1 = inlined_call_operand.vmem [shape: s32[1,256], index: 1, kind: input, shape index: {}]   ;;  %s2207_s2 = inlined_call_operand.hbm [shape: f32[128,128], index: 2, kind: input, shape index: {}]   ;;  %s2208_s3 = inlined_call_operand.vmem [shape: f32[128,1], index: 3, kind: input, shape index: {}]   ;;  %s2209_s4 = inlined_call_operand.hbm [shape: bf16[128,128], index: 4, kind: input, shape index: {}]   ;;  %s2210_s5 = inlined_call_operand.hbm [shape: bf16[128,256], index: 5, kind: input, shape index: {}]   ;;  %s2211_s6 = inlined_call_operand.hbm [shape: f32[128,128], index: 6, kind: output, shape index: {}]  }
   0x1   :  { %2222 = sst [smem:[#allocation16_spill]] %s2207_s2 }
   0x2   :  { %2223 = sst [smem:[#allocation17_spill]] %s2209_s4 }
   0x3   :  { %2224 = sst [smem:[#allocation18_spill]] %s2210_s5 }
   0x4   :  { %2225 = sst [smem:[#allocation19_spill]] %s2211_s6 }
   0x5   :  { %11 = vsyncpa [#allocation4], 0 }
   0x6   :  { %13 = vsyncpa [#allocation4 + $0x1], 0 }
   0x7   :  { %14 = vsyncpa [#allocation7], 0 }
   0x8   :  { %15 = vsyncpa [#allocation5], 0 }
   0x9   :  { %17 = vsyncpa [#allocation5 + $0x1], 0  ;;  %s1786_s21 = smov 0   ;;  %s1788_s22 = smov 0  }
   0xa   :  { %s1790_s23 = smov 0   ;;  %s1792_s24 = smov 0  }
   0xb   :  { %s1794_s25 = smov 0   ;;  %s1796_s26 = smov 0  }
   0xc   :  { %s1798_s27 = smov 0   ;;  %s1800_s28 = smov 0  }
   0xd LB: > { %2226 = sst [smem:[#allocation13_spill]] %s1708_s21  ;;  %s1217_s29 = sadd.s32 4294967295, %s1736_s28   ;;  %s1736_s28 = sphi %s1800_s28, %s23_s28   ;;  %s1732_s27 = sphi %s1798_s27, %s2258_s27   ;;  %s1728_s26 = sphi %s1796_s26, %s2257_s26   ;;  %s1724_s25 = sphi %s1794_s25, %s2256_s25   ;;  %s1720_s24 = sphi %s1792_s24, %s2255_s24   ;;  %s1716_s23 = sphi %s1790_s23, %s2254_s23   ;;  %s1712_s22 = sphi %s1788_s22, %s2253_s22   ;;  %s1708_s21 = sphi %s1786_s21, %s2252_s21  }
   0xe   : > { %s1218_s30 = sadd.s32 4294967294, %s1736_s28   ;;  %p107_p0 = scmp.ne.s32.totalorder %s1712_s22, %s1708_s21 }
   0xf   : > { %p1830_p1 = scmp.eq.s32.totalorder %s1217_s29, 0  ;;  %p1834_p2 = scmp.eq.s32.totalorder %s1217_s29, 3 }
  0x10   : > { %p205_p3 = scmp.eq.s32.totalorder %s1218_s30, 3  ;;  %p1219_p5 = scmp.ge.s32.totalorder %s1736_s28, 1 }
  0x11   : > { %s2227_s7 = scalar_select %p1830_p1, 1, 0 }
  0x12   : > { %s2228_s8 = scalar_select %p1834_p2, 1, 0 }
  0x13   : > { %p1840_p4 = por %p1830_p1, %p107_p0  ;;  %p1845_p6 = por %p205_p3, %p107_p0 }
  0x14   : > { %p212_p7 = scmp.lt.s32.totalorder %s1736_s28, 5  ;;  %s1738_s12 = smov [#allocation6]  }
  0x15   : > { %s2229_s9 = scalar_select %p1840_p4, 1, 0 }
  0x16   : > { %s2230_s10 = scalar_select %p1845_p6, 1, 0 }
  0x17   : > { %p1850_p8 = pnand %p1219_p5, %p212_p7  ;;  %s224_s13 = sshll.u32 %s1738_s12, 4  ;;  %s225_s13 = int_to_ptr.vmem [resolvable:$true] %s224_s13 }
  0x18   : > { %2231 = sst [smem:[#allocation14_spill]] %s2230_s10  ;;  %s1739_s15 = smov [#allocation8]  }
  0x19   : > { %s2232_s11 = scalar_select %p1850_p8, 1, 0 }
  0x1a   : > { %p1394_p9 = pneg %p1850_p8  ;;  %s237_s16 = sshll.u32 %s1739_s15, 4  ;;  %s1862_s16 = int_to_ptr.vmem [resolvable:$true] %s237_s16 }
  0x1b   : > { %s2234_s4 = sld [smem:[#allocation17_spill]] }
  0x1c   : > { %p1858_p10 = pnand %p1394_p9, %p1830_p1 }
  0x1e   : > { %p1550_p12 = pneg %p1858_p10 }
  0x21   : > { %s1548_s19 = scalar_lea.hbm %s2234_s4, 1024 }
  0x22   : > { %p1549_p11 = scmp.ne.s32.totalorder %s2234_s4, %s1548_s19  ;;  %p1555_p3 = scmp.lt.u32.totalorder %s1548_s19, %s2234_s4 }
  0x24   : > { %p1551_p13 = pnand %p1550_p12, %p1549_p11 }
  0x26   : > { %p1552_p0 = pneg %p1551_p13 }
  0x28   : > { %p1557_p5 = pnand %p1555_p3, %p1552_p0 }
  0x2a   : > { %1560 = shalt.err (!%p1557_p5)
}
  0x2b   : > { %s1561_s15 = scalar_lea.vmem %s225_s13, 1024  ;;  %p1569_p1 = scmp.lt.s32.totalorder %s225_s13, %s225_s13 }
  0x2c   : > { %p1562_p7 = scmp.ne.s32.totalorder %s225_s13, %s1561_s15  ;;  %p1570_p4 = scmp.lt.s32.totalorder %s1561_s15, %s1561_s15 }
  0x2e   : > { %p1564_p9 = pnand %p1562_p7, %p1550_p12  ;;  %p1571_p8 = por %p1570_p4, %p1569_p1 }
  0x30   : > { %p1565_p6 = pneg %p1564_p9 }
  0x32   : > { %p1572_p2 = pnand %p1571_p8, %p1565_p6 }
  0x34   : > { %1575 = shalt.err (!%p1572_p2)
}
  0x35   : > { %s1740_s17 = smov 64   ;;  %s1741_s18 = smov 4  }
  0x36   : > { %1397 = dma.hbm_to_vmem [thread:$0]  (!%p1858_p10), %s2234_s4, 1024, %s225_s13, [#allocation7], %s1740_s17, %s1740_s17, %s1741_s18  }
  0x37   : > { %s2235_s5 = sld [smem:[#allocation18_spill]] }
  0x3d   : > { %s1576_s12 = scalar_lea.hbm %s2235_s5, 2048 }
  0x3e   : > { %p1577_p11 = scmp.ne.s32.totalorder %s2235_s5, %s1576_s12  ;;  %p1583_p4 = scmp.lt.u32.totalorder %s1576_s12, %s2235_s5 }
  0x40   : > { %p1579_p1 = pnand %p1577_p11, %p1550_p12 }
  0x42   : > { %p1580_p2 = pneg %p1579_p1 }
  0x44   : > { %p1585_p6 = pnand %p1583_p4, %p1580_p2 }
  0x46   : > { %1588 = shalt.err (!%p1585_p6)
}
  0x47   : > { %s1589_s13 = scalar_lea.vmem %s1862_s16, 2048  ;;  %p1597_p3 = scmp.lt.s32.totalorder %s1862_s16, %s1862_s16 }
  0x48   : > { %p1590_p8 = scmp.ne.s32.totalorder %s1862_s16, %s1589_s13  ;;  %p1598_p5 = scmp.lt.s32.totalorder %s1589_s13, %s1589_s13 }
  0x4a   : > { %p1592_p13 = pnand %p1590_p8, %p1550_p12  ;;  %p1599_p7 = por %p1598_p5, %p1597_p3 }
  0x4c   : > { %p1593_p0 = pneg %p1592_p13 }
  0x4e   : > { %p1600_p9 = pnand %p1599_p7, %p1593_p0 }
  0x50   : > { %1603 = shalt.err (!%p1600_p9)
}
  0x51   : > { %s2219_s6 = smov 128   ;;  %s2220_s21 = smov 8  }
  0x52   : > { %1400 = dma.hbm_to_vmem [thread:$0]  (!%p1858_p10), %s2235_s5, 2048, %s1862_s16, [#allocation7], %s2219_s6, %s2219_s6, %s2220_s21  }
  0x53   : > { %s32_s18 = sadd.s32 1, %s1728_s26  ;;  %s35_s19 = sadd.s32 1, %s1732_s27 }
  0x54   : > { %p33_p12 = scmp.ge.s32.totalorder %s32_s18, 2  ;;  %s94_s20 = sadd.s32 1, %s1716_s23 }
  0x55   : > { %p101_p11 = scmp.ne.s32.totalorder %s1716_s23, %s1712_s22  ;;  %p102_p1 = scmp.eq.s32.totalorder %s1736_s28, 0 }
  0x56   : > { %s2260_s18 = smov (%p33_p12, %s32_s18), 0  ;;  %s2262_s19 = smov (!%p33_p12, %s35_s19), %s1732_s27 }
  0x57   : > { %p1923_p2 = por %p102_p1, %p101_p11  ;;  %p2237_p4 = scmp.ne.s32.totalorder %s2228_s8, 0 }
  0x58   : > { %p37_p10 = scmp.ge.s32.totalorder %s2262_s19, 2  ;;  %p1411_p8 = scmp.lt.s32.totalorder %s1736_s28, 4 }
  0x59   : > { %p1929_p6 = por %p2237_p4, %p101_p11  ;;  %s266_s16 = sand.u32 1, %s1716_s23  }
  0x5a   : > { %s1292_s30 = sshll.u32 %s1732_s27, 10  ;;  %s2264_s19 = smov (%p37_p10, %s2262_s19), 0 }
  0x5b   : > { %2239 = sst [smem:[#allocation15_spill]] %s2264_s19  ;;  %s1223_s12 = sshll.u32 %s266_s16, 6 }
  0x5c   : > { %s91_s15 = ssub.s32 %s1732_s27, %s2264_s19  ;;  %s2240_s2 = sld [smem:[#allocation16_spill]] }
  0x5d   : > { %p92_p13 = scmp.eq.s32.totalorder %s91_s15, 0  ;;  %s270_s8 = scalar_lea.vmem [#allocation3], %s1223_s12 }
  0x5e   : > { %s277_s6 = sshll.u32 %s270_s8, 4  ;;  %p1947_p0 = pnand %p1411_p8, %p1923_p2  ;;  %s1954_s6 = int_to_ptr.vmem [resolvable:$true] %s277_s6 }
  0x5f   : > { %s1952_s4 = scalar_select %p92_p13, %s1716_s23, %s94_s20  }
  0x60   : > { %s1956_s15 = scalar_lea.sflag [#allocation4], %s266_s16  ;;  %p1606_p5 = pneg %p1947_p0 }
  0x62   : > { %s1943_s17 = scalar_lea.hbm %s2240_s2, %s1292_s30  ;;  %s1609_s13 = scalar_lea.hbm %s2240_s2, 2048 }
  0x63   : > { %s1604_s30 = scalar_lea.hbm %s1943_s17, 1024  ;;  %p1610_p12 = scmp.lt.u32.totalorder %s1943_s17, %s2240_s2 }
  0x64   : > { %p1605_p3 = scmp.ne.s32.totalorder %s1943_s17, %s1604_s30  ;;  %p1611_p11 = scmp.lt.u32.totalorder %s1609_s13, %s1604_s30 }
  0x65   : > { %p1613_p2 = scmp.lt.u32.totalorder %s1604_s30, %s1943_s17 }
  0x66   : > { %p1607_p7 = pnand %p1606_p5, %p1605_p3  ;;  %p1612_p1 = por %p1611_p11, %p1610_p12 }
  0x68   : > { %p1608_p9 = pneg %p1607_p7  ;;  %p1614_p4 = por %p1613_p2, %p1612_p1 }
  0x6a   : > { %p1615_p10 = pnand %p1614_p4, %p1608_p9 }
  0x6c   : > { %1618 = shalt.err (!%p1615_p10)
}
  0x6d   : > { %s1619_s20 = scalar_lea.vmem %s1954_s6, 1024  ;;  %s1744_s16 = smov [#allocation3]  }
  0x6e   : > { %p1620_p8 = scmp.ne.s32.totalorder %s1954_s6, %s1619_s20  ;;  %s1624_s14 = sshll.u32 %s1744_s16, 4  ;;  %s1625_s14 = int_to_ptr.vmem [resolvable:$false] %s1624_s14 }
  0x6f   : > { %s1626_s12 = scalar_lea.vmem %s1625_s14, 2048  ;;  %p1627_p7 = scmp.lt.s32.totalorder %s1954_s6, %s1625_s14 }
  0x70   : > { %p1622_p13 = pnand %p1620_p8, %p1606_p5  ;;  %p1628_p12 = scmp.lt.s32.totalorder %s1626_s12, %s1619_s20 }
  0x72   : > { %p1623_p3 = pneg %p1622_p13  ;;  %p1629_p11 = por %p1628_p12, %p1627_p7 }
  0x74   : > { %p1630_p1 = pnand %p1629_p11, %p1623_p3 }
  0x76   : > { %1633 = shalt.err (!%p1630_p1)
}
  0x77   : > { %s2242_s30 = smov 8   ;;  %s2243_s13 = smov 128  }
  0x78   : > { %1404 = dma.hbm_to_vmem [thread:$0]  (!%p1947_p0), %s1943_s17, 1024, %s1954_s6, %s1956_s15, %s2243_s13, %s2243_s13, %s2242_s30  }
  0x79   : > { %p2244_p5 = scmp.ne.s32.totalorder %s2232_s11, 0 }
  0x7a   : > { %s1990_s10 = sand.u32 (!%p2244_p5), 1, %s1712_s22   ;;  %p2245_p9 = scmp.ne.s32.totalorder (!%p2244_p5), %s2229_s9, 0 }
  0x7b   : > { %298 = sbr.rel (%p2244_p5) target bundleno = 777 (0x309), region = 44  ;;  %s1227_s8 = sshll.u32 (!%p2244_p5), %s1990_s10, 6 }
  0x7c   : > { %s301_s20 = scalar_lea.sflag (!%p2244_p5), [#allocation4], %s1990_s10  ;;  %s1994_s16 = scalar_lea.vmem (!%p2244_p5), [#allocation3], %s1227_s8 }
  0x82   : > { %1695 = dma.done.wait (%p2245_p9), %s301_s20, 1024  }
  0x83   : > { %1697 = vsyncadd (%p2245_p9), %s301_s20, 4294966272  ;;  %p2246_p0 = scmp.ne.s32.totalorder %s2227_s7, 0 }
  0x85   : > { %1699 = dma.done.wait (%p2246_p0), [#allocation7], 3072  }
  0x86   : > { %1701 = vsyncadd (%p2246_p0), [#allocation7], 4294964224  ;;  %s1231_s11 = sshll.u32 %s1720_s24, 4  ;;  %p360_p4 = scmp.lt.s32.totalorder %s1720_s24, 1 }
  0x87   : > { %p355_p2 = scmp.lt.s32.totalorder %s1231_s11, 31  ;;  %s1233_s6 = sshll.u32 %s1724_s25, 3 }
  0x88   : > { %s2008_s21 = scalar_select %p360_p4, %s1720_s24, 1 }
  0x89   : > { %s2266_s11 = smov (!%p355_p2, %s1231_s11), 31  ;;  %p365_p10 = scmp.lt.s32.totalorder %s1233_s6, 15 }
  0x8a   : > { %s1232_s9 = sshll.u32 %s2266_s11, 2  ;;  %s362_s30 = scalar_lea.vmem %s2206_s1, %s2008_s21 }
  0x8b   : > { %s2013_s14 = scalar_lea.vmem %s2205_s0, %s1232_s9  ;;  %s2268_s6 = smov (!%p365_p10, %s1233_s6), 15 }
  0x8c   : > { %s1234_s13 = sshll.u32 %s2268_s6, 3  ;;  %s2024_s19 = scalar_lea.vmem [#allocation9], %s1227_s8 }
  0x8d   : > { %s2022_s5 = scalar_lea.vmem %s2208_s3, %s1234_s13  ;;  %p1235_p8 = scmp.ne.s32.totalorder %s1720_s24, 0 }
  0x8e   : > { %v1745_v0 = vmov (!%p1235_p8), 0.0  }
  0x8f   : > { %375 = sbr.rel (%p1235_p8) target bundleno = 150 (0x96), region = 60  ;;  %376 = vst [vmem:[#allocation2] sm:$0xff] (!%p1235_p8), %v1745_v0  ;;  %377 = vst [vmem:[#allocation2 + $0x8] sm:$0xff] (!%p1235_p8), %v1745_v0 }
  0x90   : > { %378 = vst [vmem:[#allocation2 + $0x10] sm:$0xff] (!%p1235_p8), %v1745_v0  ;;  %379 = vst [vmem:[#allocation2 + $0x18] sm:$0xff] (!%p1235_p8), %v1745_v0 }
  0x91   : > { %380 = vst [vmem:[#allocation2 + $0x20] sm:$0xff] (!%p1235_p8), %v1745_v0  ;;  %381 = vst [vmem:[#allocation2 + $0x28] sm:$0xff] (!%p1235_p8), %v1745_v0 }
  0x92   : > { %382 = vst [vmem:[#allocation2 + $0x30] sm:$0xff] (!%p1235_p8), %v1745_v0  ;;  %383 = vst [vmem:[#allocation2 + $0x38] sm:$0xff] (!%p1235_p8), %v1745_v0 }
  0x96 PF: > { %v1490_v1 = vld [vmem:[%s2013_s14] sm:$0xff]   ;;  %s1236_s2 = sshll.u32 %s1724_s25, 6  ;;  %v386_v2 = vlaneseq  ;;  %v1491_v3 = vld [vmem:[%s2013_s14 + $0x8] sm:$0xff]   ;;  %v1492_v6 = vld [vmem:[%s2013_s14 + $0x10] sm:$0xff]   ;;  %v1746_v17 = vmov 1.0|1.0  }
  0x97   : > { %1318 = vmatprep.subr.bf16.mxu0 %v1490_v1  ;;  %1366 = vmatprep.subr.bf16.mxu1 %v1490_v1  ;;  %v395_v5 = vstv %s1236_s2  ;;  %v1493_v13 = vld [vmem:[%s2013_s14 + $0x18] sm:$0xff]   ;;  %v1237_v14 = vld [vmem:[%s362_s30] ss:$0 sm:$0xff]  ;;  %v1495_v18 = vld [vmem:[%s2013_s14 + $0x28] sm:$0xff]   ;;  %p1262_p13 = scmp.ne.s32.totalorder %s1720_s24, 1 }
  0x98   : > { %v387_v4 = vshrl.u32 %v386_v2, 7  ;;  %1319 = vmatpush3.bf16.msra.mxu0 %v1490_v1  ;;  %1374 = vmatpush3.bf16.msra.mxu1 %v1490_v1  ;;  %v1494_v16 = vld [vmem:[%s2013_s14 + $0x20] sm:$0xff]   ;;  %v1496_v21 = vld [vmem:[%s2013_s14 + $0x30] sm:$0xff]   ;;  %v1497_v26 = vld [vmem:[%s2013_s14 + $0x38] sm:$0xff]   ;;  %v1747_v55 = vmov (!%p1262_p13), 0  }
  0x99   : > { %1320 = vmatprep.subr.bf16.mxu0 %v1491_v3  ;;  %1367 = vmatprep.subr.bf16.mxu1 %v1491_v3  ;;  %v438_v29 = vld [vmem:[#allocation2 + $0x10] sm:$0xff]  ;;  %v436_v31 = vld [vmem:[#allocation2] sm:$0xff]  ;;  %v439_v35 = vld [vmem:[#allocation2 + $0x18] sm:$0xff] }
  0x9a   : > { %v388_v7 = vadd.s32 8, %v387_v4  ;;  %v396_v8 = vadd.s32 %v395_v5, %v387_v4  ;;  %v391_v9 = vadd.s32 32, %v387_v4  ;;  %v392_v11 = vadd.s32 40, %v387_v4  ;;  %v442_v30 = vld [vmem:[#allocation2 + $0x30] sm:$0xff]  ;;  %v440_v32 = vld [vmem:[#allocation2 + $0x20] sm:$0xff]  ;;  %v443_v36 = vld [vmem:[#allocation2 + $0x38] sm:$0xff]  ;;  %1499 = vset.pattern.permute.xlu1 (!%p1262_p13), %v1747_v55  ;;  %1498 = vset.pattern.permute.xlu0 (!%p1262_p13), %v1747_v55 }
  0x9b   : > { %v389_v19 = vadd.s32 16, %v387_v4  ;;  %v390_v20 = vadd.s32 24, %v387_v4  ;;  %v393_v22 = vadd.s32 48, %v387_v4  ;;  %v394_v23 = vadd.s32 56, %v387_v4  ;;  %v437_v41 = vld [vmem:[#allocation2 + $0x8] sm:$0xff]  ;;  %v2046_v59 = vld [vmem:[%s2022_s5 + $0x10] sm:$0xff] (!%p1262_p13) }
  0x9c   : > { %v397_v10 = vadd.s32 %v395_v5, %v388_v7  ;;  %1321 = vmatpush3.bf16.msra.mxu0 %v1491_v3  ;;  %1375 = vmatpush3.bf16.msra.mxu1 %v1491_v3  ;;  %v400_v12 = vadd.s32 %v395_v5, %v391_v9  ;;  %v401_v15 = vadd.s32 %v395_v5, %v392_v11  ;;  %v441_v42 = vld [vmem:[#allocation2 + $0x28] sm:$0xff]  ;;  %v1503_v56 = vld [vmem:[#allocation8 + $0x14] ss:$8 sps:$4 sm:$0xff] (!%p1262_p13)   ;;  %v1505_v57 = vld [vmem:[#allocation8 + $0x10] ss:$8 sps:$4 sm:$0xff] (!%p1262_p13)   ;;  %v603_v61 = vmax.f32 (!%p1262_p13), %v2046_v59, 1.0 }
  0x9d   : > { %1322 = vmatprep.subr.bf16.mxu0 %v1492_v6  ;;  %1368 = vmatprep.subr.bf16.mxu1 %v1492_v6  ;;  %vm408_vm0 = vcmp.eq.s32.totalorder %v396_v8, %v1237_v14  ;;  %v398_v24 = vadd.s32 %v395_v5, %v389_v19  ;;  %v399_v25 = vadd.s32 %v395_v5, %v390_v20  ;;  %v1500_v53 = vld [vmem:[#allocation8 + $0x4] ss:$8 sps:$4 sm:$0xff] (!%p1262_p13)   ;;  %v1502_v54 = vld [vmem:[#allocation8] ss:$8 sps:$4 sm:$0xff] (!%p1262_p13)   ;;  %v2054_v63 = vld [vmem:[%s2022_s5 + $0x18] sm:$0xff] (!%p1262_p13)  ;;  %vm989_vm15 = vcmp.gt.f32.partialorder (!%p1262_p13), %v2046_v59, 0.0 }
  0x9e   : > { %vm409_vm1 = vcmp.eq.s32.totalorder %v397_v10, %v1237_v14  ;;  %vm412_vm2 = vcmp.eq.s32.totalorder %v400_v12, %v1237_v14  ;;  %vm413_vm4 = vcmp.eq.s32.totalorder %v401_v15, %v1237_v14  ;;  %v402_v27 = vadd.s32 %v395_v5, %v393_v22  ;;  %v1506_v58 = vld [vmem:[#allocation8 + $0x24] ss:$8 sps:$4 sm:$0xff] (!%p1262_p13)   ;;  %v1508_v2 = vld [vmem:[#allocation8 + $0x20] ss:$8 sps:$4 sm:$0xff] (!%p1262_p13)   ;;  %v1509_v3 = vld [vmem:[#allocation8 + $0x34] ss:$8 sps:$4 sm:$0xff] (!%p1262_p13)  }
  0x9f   : > { %vm1254_vm3 = vmpackc.low %vm409_vm1, %vm408_vm0  ;;  %v403_v28 = vadd.s32 %v395_v5, %v394_v23  ;;  %vm410_vm6 = vcmp.eq.s32.totalorder %v398_v24, %v1237_v14  ;;  %vm411_vm7 = vcmp.eq.s32.totalorder %v399_v25, %v1237_v14  ;;  %v2049_v60 = vld [vmem:[%s2022_s5] sm:$0xff] (!%p1262_p13)  ;;  %v604_v0 = vmax.f32 (!%p1262_p13), %v2054_v63, 1.0  ;;  %v2058_v1 = vld [vmem:[%s2022_s5 + $0x8] sm:$0xff] (!%p1262_p13) }
  0xa0   : > { %1323 = vmatpush3.bf16.msra.mxu0 %v1492_v6  ;;  %1376 = vmatpush3.bf16.msra.mxu1 %v1492_v6  ;;  %vm1258_vm5 = vmpackc.low %vm413_vm4, %vm412_vm2  ;;  %vm414_vm8 = vcmp.eq.s32.totalorder %v402_v27, %v1237_v14  ;;  %v601_v62 = vmax.f32 (!%p1262_p13), %v2049_v60, 1.0  ;;  %1532 = vrcp.f32 (!%p1262_p13), %v603_v61  ;;  %v602_v4 = vmax.f32 (!%p1262_p13), %v2058_v1, 1.0  ;;  %v2062_v5 = vld [vmem:[%s2022_s5 + $0x28] sm:$0xff] (!%p1262_p13)  ;;  %v2065_v6 = vld [vmem:[%s2022_s5 + $0x20] sm:$0xff] (!%p1262_p13) }
  0xa1   : > { %1324 = vmatprep.subr.bf16.mxu0 %v1493_v13  ;;  %1369 = vmatprep.subr.bf16.mxu1 %v1493_v13  ;;  %vm415_vm9 = vcmp.eq.s32.totalorder %v403_v28, %v1237_v14  ;;  %vm1256_vm10 = vmpackc.low %vm411_vm7, %vm410_vm6  ;;  %v606_v7 = vmax.f32 (!%p1262_p13), %v2062_v5, 1.0  ;;  %v605_v8 = vmax.f32 (!%p1262_p13), %v2065_v6, 1.0  ;;  %v2070_v9 = vld [vmem:[%s2022_s5 + $0x38] sm:$0xff] (!%p1262_p13)  ;;  %v2073_v11 = vld [vmem:[%s2022_s5 + $0x30] sm:$0xff] (!%p1262_p13)  ;;  %vm988_vm12 = vcmp.gt.f32.partialorder (!%p1262_p13), %v2058_v1, 0.0 }
  0xa2   : > { %1334 = vmatprep.mubr.msk.bf16.mxu0 %vm1254_vm3, %v1746_v17  ;;  %1338 = vmatprep.mubr.msk.bf16.mxu1 %vm1258_vm5, %v1746_v17  ;;  %vm1260_vm11 = vmpackc.low %vm415_vm9, %vm414_vm8  ;;  %1534 = vrcp.f32 (!%p1262_p13), %v601_v62  ;;  %v1511_v10 = vld [vmem:[#allocation8 + $0x30] ss:$8 sps:$4 sm:$0xff] (!%p1262_p13)   ;;  %v1512_v12 = vld [vmem:[#allocation8 + $0x44] ss:$8 sps:$4 sm:$0xff] (!%p1262_p13)   ;;  %v607_v14 = vmax.f32 (!%p1262_p13), %v2073_v11, 1.0  ;;  %vm987_vm13 = vcmp.gt.f32.partialorder (!%p1262_p13), %v2049_v60, 0.0 }
  0xa3   : > { %1536 = vrcp.f32 (!%p1262_p13), %v604_v0  ;;  %v1514_v15 = vld [vmem:[#allocation8 + $0x40] ss:$8 sps:$4 sm:$0xff] (!%p1262_p13)   ;;  %v1517_v22 = vld [vmem:[#allocation8 + $0x50] ss:$8 sps:$4 sm:$0xff] (!%p1262_p13)   ;;  %v1518_v24 = vld [vmem:[#allocation8 + $0x64] ss:$8 sps:$4 sm:$0xff] (!%p1262_p13)  }
  0xa4   : > { %1325 = vmatpush3.bf16.msra.mxu0 %v1493_v13  ;;  %1377 = vmatpush3.bf16.msra.mxu1 %v1493_v13  ;;  %1538 = vrcp.f32 (!%p1262_p13), %v602_v4  ;;  %v608_v13 = vmax.f32 (!%p1262_p13), %v2070_v9, 1.0  ;;  %v1525_v20 = vld [vmem:[#allocation6 + $0x8] sm:$0xff] (!%p1262_p13)   ;;  %v1526_v25 = vld [vmem:[#allocation6 + $0x10] sm:$0xff] (!%p1262_p13)   ;;  %vm990_vm14 = vcmp.gt.f32.partialorder (!%p1262_p13), %v2054_v63, 0.0  ;;  %vm992_vm0 = vcmp.gt.f32.partialorder (!%p1262_p13), %v2062_v5, 0.0 }
  0xa5   : > { %1326 = vmatprep.subr.bf16.mxu0 %v1494_v16  ;;  %1370 = vmatprep.subr.bf16.mxu1 %v1494_v16  ;;  %1540 = vrcp.f32 (!%p1262_p13), %v606_v7  ;;  %v1520_v27 = vld [vmem:[#allocation8 + $0x60] ss:$8 sps:$4 sm:$0xff] (!%p1262_p13)   ;;  %vm991_vm1 = vcmp.gt.f32.partialorder (!%p1262_p13), %v2065_v6, 0.0  ;;  %vm994_vm2 = vcmp.gt.f32.partialorder (!%p1262_p13), %v2070_v9, 0.0  ;;  %vm993_vm3 = vcmp.gt.f32.partialorder (!%p1262_p13), %v2073_v11, 0.0 }
  0xa6   : > { %1542 = vrcp.f32 (!%p1262_p13), %v605_v8 }
  0xa7   : > { %1544 = vrcp.f32 (!%p1262_p13), %v608_v13 }
  0xa8   : > { %1327 = vmatpush3.bf16.msra.mxu0 %v1494_v16  ;;  %1378 = vmatpush3.bf16.msra.mxu1 %v1494_v16  ;;  %v1515_v16 = vld [vmem:[#allocation8 + $0x54] ss:$8 sps:$4 sm:$0xff] (!%p1262_p13)   ;;  %1546 = vrcp.f32 (!%p1262_p13), %v607_v14 }
  0xa9   : > { %1328 = vmatprep.subr.bf16.mxu0 %v1495_v18  ;;  %1371 = vmatprep.subr.bf16.mxu1 %v1495_v18 }
  0xac   : > { %1329 = vmatpush3.bf16.msra.mxu0 %v1495_v18  ;;  %1379 = vmatpush3.bf16.msra.mxu1 %v1495_v18  ;;  %v1524_v18 = vld [vmem:[#allocation6] sm:$0xff] (!%p1262_p13)  }
  0xad   : > { %1330 = vmatprep.subr.bf16.mxu0 %v1496_v21  ;;  %1372 = vmatprep.subr.bf16.mxu1 %v1496_v21 }
  0xb0   : > { %1331 = vmatpush3.bf16.msra.mxu0 %v1496_v21  ;;  %1380 = vmatpush3.bf16.msra.mxu1 %v1496_v21 }
  0xb1   : > { %1332 = vmatprep.subr.bf16.mxu0 %v1497_v26  ;;  %1373 = vmatprep.subr.bf16.mxu1 %v1497_v26 }
  0xb4   : > { %1333 = vmatpush3.bf16.msra.mxu0 %v1497_v26  ;;  %1381 = vmatpush3.bf16.msra.mxu1 %v1497_v26 }
  0xb5   : > { %914 = vmatprep.subr.bf16.mxu1 (!%p1262_p13), %v1500_v53  ;;  %1342 = vmatprep.subr.bf16.mxu0 (!%p1262_p13), %v1524_v18  ;;  %v1001_v53 = vsel (!%p1262_p13), %vm993_vm3, 1, %v1747_v55 }
  0xb7   : > { %1335 = vmatmul.mubr.msk.bf16.vlgmr.msra.gmra.mrb[0].mxu0 %vm1256_vm10, %v1746_v17  ;;  %1339 = vmatmul.mubr.msk.bf16.vlgmr.msra.gmra.mrb[0].mxu1 %vm1260_vm11, %v1746_v17  ;;  %v1533_v17 = vpop.eup (!%p1262_p13), %1532 }
  0xb8   : > { %946 = vmatprep.mubr.bf16.mxu1 (!%p1262_p13), %v1747_v55  ;;  %915 = vmatpush1.bf16.msra.mxu1 (!%p1262_p13), %v1502_v54  ;;  %v1535_v19 = vpop.eup (!%p1262_p13), %1534 }
  0xb9   : > { %916 = vmatprep.subr.bf16.mxu1 (!%p1262_p13), %v1503_v56  ;;  %637 = vperm.xlu1 (!%p1262_p13), %1499, %v1533_v17   ;;  %v1537_v21 = vpop.eup (!%p1262_p13), %1536  ;;  %v2121_v56 = vld [vmem:[%s1994_s16 + $0x30] sm:$0xff] (!%p1262_p13) }
  0xba   : > { %627 = vperm.xlu0 (!%p1262_p13), %1498, %v1535_v19   ;;  %v1539_v23 = vpop.eup (!%p1262_p13), %1538  ;;  %1343 = vmatpush3.bf16.msra.mxu0 (!%p1262_p13), %v1524_v18 }
  0xbb   : > { %1344 = vmatprep.subr.bf16.mxu0 (!%p1262_p13), %v1525_v20  ;;  %v1541_v26 = vpop.eup (!%p1262_p13), %1540 }
  0xbc   : > { %917 = vmatpush1.bf16.msra.mxu1 (!%p1262_p13), %v1505_v57  ;;  %v1543_v28 = vpop.eup (!%p1262_p13), %1542  ;;  %v2124_v57 = vld [vmem:[%s1994_s16 + $0x38] sm:$0xff] (!%p1262_p13) }
  0xbd   : > { %918 = vmatprep.subr.bf16.mxu1 (!%p1262_p13), %v1506_v58  ;;  %642 = vperm.xlu1 (!%p1262_p13), %1499, %v1537_v21   ;;  %v817_v58 = vpack.c.bf16 (!%p1262_p13), %v2124_v57, %v2121_v56 }
  0xbe   : > { %632 = vperm.xlu0 (!%p1262_p13), %1498, %v1539_v23   ;;  %1345 = vmatpush3.bf16.msra.mxu0 (!%p1262_p13), %v1525_v20 }
  0xbf   : > { %1346 = vmatprep.subr.bf16.mxu0 (!%p1262_p13), %v1526_v25 }
  0xc0   : > { %919 = vmatpush1.bf16.msra.mxu1 (!%p1262_p13), %v1508_v2 }
  0xc1   : > { %920 = vmatprep.subr.bf16.mxu1 (!%p1262_p13), %v1509_v3  ;;  %652 = vperm.xlu1 (!%p1262_p13), %1499, %v1541_v26  }
  0xc2   : > { %647 = vperm.xlu0 (!%p1262_p13), %1498, %v1543_v28   ;;  %1347 = vmatpush3.bf16.msra.mxu0 (!%p1262_p13), %v1526_v25 }
  0xc4   : > { %921 = vmatpush1.bf16.msra.mxu1 (!%p1262_p13), %v1511_v10 }
  0xc5   : > { %922 = vmatprep.subr.bf16.mxu1 (!%p1262_p13), %v1512_v12 }
  0xc8   : > { %923 = vmatpush1.bf16.msra.mxu1 (!%p1262_p13), %v1514_v15 }
  0xc9   : > { %924 = vmatprep.subr.bf16.mxu1 (!%p1262_p13), %v1515_v16 }
  0xcc   : > { %925 = vmatpush1.bf16.msra.mxu1 (!%p1262_p13), %v1517_v22 }
  0xcd   : > { %926 = vmatprep.subr.bf16.mxu1 (!%p1262_p13), %v1518_v24 }
  0xd0   : > { %927 = vmatpush1.bf16.msra.mxu1 (!%p1262_p13), %v1520_v27 }
 0x138   : > { %v638_v59 = vpop.permute.xlu1 (!%p1262_p13), %637 }
 0x139   : > { %v628_v60 = vpop.permute.xlu0 (!%p1262_p13), %627 }
 0x13c   : > { %v643_v1 = vpop.permute.xlu1 (!%p1262_p13), %642 }
 0x13d   : > { %v633_v4 = vpop.permute.xlu0 (!%p1262_p13), %632 }
 0x140   : > { %v653_v9 = vpop.permute.xlu1 (!%p1262_p13), %652 }
 0x141   : > { %v648_v12 = vpop.permute.xlu0 (!%p1262_p13), %647 }
 0x18a   : > { %v1336_v33 = vpop.f32.mrb[0].mxu0  ;;  %v1340_v34 = vpop.f32.mrb[0].mxu1  ;;  %592 = sbr.rel (%p1262_p13) target bundleno = 752 (0x2f0), region = 64 }
 0x18b   : > { %v575_v37 = vadd.f32 %v1336_v33, %v438_v29  ;;  %v579_v38 = vadd.f32 %v1340_v34, %v442_v30  ;;  %v542_v39 = vpop.f32.mrb[1].mxu0  ;;  %v558_v40 = vpop.f32.mrb[1].mxu1  ;;  %v1521_v29 = vld [vmem:[#allocation8 + $0x74] ss:$8 sps:$4 sm:$0xff] (!%p1262_p13)   ;;  %v2078_v33 = vld [vmem:[%s1994_s16] sm:$0xff] (!%p1262_p13)  ;;  %v2081_v34 = vld [vmem:[%s1994_s16 + $0x8] sm:$0xff] (!%p1262_p13) }
 0x18c   : > { %v573_v43 = vadd.f32 %v542_v39, %v436_v31  ;;  %v577_v44 = vadd.f32 %v558_v40, %v440_v32  ;;  %v1337_v45 = vpop.f32.mrb[2].mxu0  ;;  %v1341_v46 = vpop.f32.mrb[2].mxu1  ;;  %v1527_v30 = vld [vmem:[#allocation6 + $0x18] sm:$0xff] (!%p1262_p13)   ;;  %928 = vmatprep.subr.bf16.mxu1 (!%p1262_p13), %v1521_v29  ;;  %v1528_v39 = vld [vmem:[#allocation6 + $0x20] sm:$0xff] (!%p1262_p13)   ;;  %v1529_v40 = vld [vmem:[#allocation6 + $0x28] sm:$0xff] (!%p1262_p13)  }
 0x18d   : > { %583 = vst [vmem:[#allocation2 + $0x10] sm:$0xff] %v575_v37  ;;  %587 = vst [vmem:[#allocation2 + $0x30] sm:$0xff] %v579_v38  ;;  %v576_v47 = vadd.f32 %v1337_v45, %v439_v35  ;;  %v580_v48 = vadd.f32 %v1341_v46, %v443_v36  ;;  %v545_v49 = vpop.f32.mrb[3].mxu0  ;;  %v561_v50 = vpop.f32.mrb[3].mxu1  ;;  %v1523_v32 = vld [vmem:[#allocation8 + $0x70] ss:$8 sps:$4 sm:$0xff] (!%p1262_p13)   ;;  %v814_v36 = vpack.c.bf16 (!%p1262_p13), %v2081_v34, %v2078_v33  ;;  %1348 = vmatprep.subr.bf16.mxu0 (!%p1262_p13), %v1527_v30 }
 0x18e   : > { %581 = vst [vmem:[#allocation2] sm:$0xff] %v573_v43  ;;  %585 = vst [vmem:[#allocation2 + $0x20] sm:$0xff] %v577_v44  ;;  %v574_v51 = vadd.f32 %v545_v49, %v437_v41  ;;  %v578_v52 = vadd.f32 %v561_v50, %v441_v42  ;;  %v1545_v31 = vpop.eup (!%p1262_p13), %1544  ;;  %v996_v37 = vsel (!%p1262_p13), %vm988_vm12, 1, %v1747_v55  ;;  %929 = vmatpush1.bf16.msra.mxu1 (!%p1262_p13), %v1523_v32  ;;  %v995_v38 = vsel (!%p1262_p13), %vm987_vm13, 1, %v1747_v55  ;;  %v2094_v42 = vld [vmem:[%s1994_s16 + $0x10] sm:$0xff] (!%p1262_p13)  ;;  %v2097_v43 = vld [vmem:[%s1994_s16 + $0x18] sm:$0xff] (!%p1262_p13) }
 0x18f   : > { %584 = vst [vmem:[#allocation2 + $0x18] sm:$0xff] %v576_v47  ;;  %588 = vst [vmem:[#allocation2 + $0x38] sm:$0xff] %v580_v48  ;;  %v1547_v35 = vpop.eup (!%p1262_p13), %1546  ;;  %662 = vperm.xlu1 (!%p1262_p13), %1499, %v1545_v31   ;;  %1349 = vmatpush3.bf16.msra.mxu0 (!%p1262_p13), %v1527_v30  ;;  %v998_v41 = vsel (!%p1262_p13), %vm990_vm14, 1, %v1747_v55  ;;  %v997_v44 = vsel (!%p1262_p13), %vm989_vm15, 1, %v1747_v55  ;;  %v815_v45 = vpack.c.bf16 (!%p1262_p13), %v2097_v43, %v2094_v42  ;;  %v1000_v46 = vsel (!%p1262_p13), %vm992_vm0, 1, %v1747_v55  ;;  %v1530_v48 = vld [vmem:[#allocation6 + $0x30] sm:$0xff] (!%p1262_p13)  }
 0x190   : > { %582 = vst [vmem:[#allocation2 + $0x8] sm:$0xff] %v574_v51  ;;  %586 = vst [vmem:[#allocation2 + $0x28] sm:$0xff] %v578_v52  ;;  %657 = vperm.xlu0 (!%p1262_p13), %1498, %v1547_v35   ;;  %1350 = vmatprep.subr.bf16.mxu0 (!%p1262_p13), %v1528_v39  ;;  %v999_v47 = vsel (!%p1262_p13), %vm991_vm1, 1, %v1747_v55  ;;  %v1531_v49 = vld [vmem:[#allocation6 + $0x38] sm:$0xff] (!%p1262_p13)   ;;  %v1002_v50 = vsel (!%p1262_p13), %vm994_vm2, 1, %v1747_v55  ;;  %v2111_v51 = vld [vmem:[%s1994_s16 + $0x20] sm:$0xff] (!%p1262_p13) }
 0x191   : > { %947 = vmatmul.mubr.bf16.vlgmr.msra.gmra.mrb[0].mxu1 %v814_v36  ;;  %v2114_v52 = vld [vmem:[%s1994_s16 + $0x28] sm:$0xff] }
 0x192   : > { %956 = vmatprep.mubr.bf16.mxu1 %v1747_v55  ;;  %v816_v54 = vpack.c.bf16 %v2114_v52, %v2111_v51 }
 0x193   : > { %1007 = vperm.xlu1 %1499, %v996_v37   ;;  %1351 = vmatpush3.bf16.msra.mxu0 %v1528_v39 }
 0x194   : > { %1004 = vperm.xlu0 %1498, %v995_v38   ;;  %1352 = vmatprep.subr.bf16.mxu0 %v1529_v40  ;;  %v619_v61 = vld [vmem:[#allocation2 + $0x10] sm:$0xff] }
 0x195   : > { %v617_v63 = vld [vmem:[#allocation2] sm:$0xff]  ;;  %v667_v2 = vmul.f32 %v638_v59, %v619_v61  ;;  %v623_v15 = vld [vmem:[#allocation2 + $0x30] sm:$0xff] }
 0x196   : > { %v620_v62 = vld [vmem:[#allocation2 + $0x18] sm:$0xff]  ;;  %v665_v5 = vmul.f32 %v628_v60, %v617_v63  ;;  %v621_v8 = vld [vmem:[#allocation2 + $0x20] sm:$0xff] }
 0x197   : > { %1013 = vperm.xlu1 %1499, %v998_v41   ;;  %1353 = vmatpush3.bf16.msra.mxu0 %v1529_v40  ;;  %v618_v0 = vld [vmem:[#allocation2 + $0x8] sm:$0xff]  ;;  %v668_v3 = vmul.f32 %v643_v1, %v620_v62  ;;  %v669_v13 = vmul.f32 %v648_v12, %v621_v8  ;;  %v624_v14 = vld [vmem:[#allocation2 + $0x38] sm:$0xff] }
 0x198   : > { %1010 = vperm.xlu0 %1498, %v997_v44   ;;  %1354 = vmatprep.subr.bf16.mxu0 %v1530_v48  ;;  %v622_v6 = vld [vmem:[#allocation2 + $0x28] sm:$0xff] }
 0x199   : > { %957 = vmatmul.mubr.bf16.gmra.mrb[4].mxu1 %v815_v45  ;;  %v674_v7 = vpack.c.bf16 %v668_v3, %v667_v2  ;;  %v670_v11 = vmul.f32 %v653_v9, %v622_v6 }
 0x19a   : > { %966 = vmatprep.mubr.bf16.mxu1 %v1747_v55 }
 0x19b   : > { %1019 = vperm.xlu1 %1499, %v1000_v46   ;;  %1355 = vmatpush3.bf16.msra.mxu0 %v1530_v48  ;;  %v675_v16 = vpack.c.bf16 %v670_v11, %v669_v13 }
 0x19c   : > { %1016 = vperm.xlu0 %1498, %v999_v47   ;;  %1356 = vmatprep.subr.bf16.mxu0 %v1531_v49 }
 0x19f   : > { %1025 = vperm.xlu1 %1499, %v1002_v50   ;;  %1357 = vmatpush3.bf16.msra.mxu0 %v1531_v49 }
 0x1a0   : > { %1022 = vperm.xlu0 %1498, %v1001_v53  }
 0x1a1   : > { %967 = vmatmul.mubr.bf16.gmra.mrb[8].mxu1 %v816_v54 }
 0x1a2   : > { %976 = vmatprep.mubr.bf16.mxu1 %v1747_v55  ;;  %v666_v55 = vmul.f32 %v633_v4, %v618_v0 }
 0x1a4   : > { %v673_v10 = vpack.c.bf16 %v666_v55, %v665_v5 }
 0x1a6   : > { %1358 = vmatprep.mubr.bf16.mxu0 %v673_v10 }
 0x1a7   : > { %1359 = vmatmul.mubr.bf16.vlgmr.msra.gmra.mrb[0].mxu0 %v674_v7 }
 0x1a8   : > { %1362 = vmatprep.mubr.bf16.mxu0 %v675_v16 }
 0x1a9   : > { %977 = vmatmul.mubr.bf16.gmra.mrb[12].mxu1 %v817_v58 }
 0x20e   : > { %v663_v17 = vpop.permute.xlu1 %662 }
 0x20f   : > { %v672_v18 = vmul.f32 %v663_v17, %v624_v14  ;;  %v658_v19 = vpop.permute.xlu0 %657 }
 0x210   : > { %v671_v20 = vmul.f32 %v658_v19, %v623_v15 }
 0x212   : > { %v676_v21 = vpack.c.bf16 %v672_v18, %v671_v20  ;;  %v1008_v23 = vpop.permute.xlu1 %1007 }
 0x213   : > { %v1005_v22 = vpop.permute.xlu0 %1004  ;;  %vm1028_vm5 = vcmp.eq.s32.totalorder %v1008_v23, 1 }
 0x214   : > { %1363 = vmatmul.mubr.bf16.gmra.mrb[4].mxu0 %v676_v21  ;;  %vm1027_vm4 = vcmp.eq.s32.totalorder %v1005_v22, 1 }
 0x216   : > { %v1014_v31 = vpop.permute.xlu1 %1013 }
 0x217   : > { %v1011_v30 = vpop.permute.xlu0 %1010  ;;  %vm1030_vm7 = vcmp.eq.s32.totalorder %v1014_v31, 1 }
 0x218   : > { %vm1029_vm6 = vcmp.eq.s32.totalorder %v1011_v30, 1 }
 0x21a   : > { %v1020_v41 = vpop.permute.xlu1 %1019 }
 0x21b   : > { %v1017_v40 = vpop.permute.xlu0 %1016  ;;  %vm1032_vm9 = vcmp.eq.s32.totalorder %v1020_v41, 1 }
 0x21c   : > { %vm1031_vm8 = vcmp.eq.s32.totalorder %v1017_v40, 1 }
 0x21e   : > { %v1026_v53 = vpop.permute.xlu1 %1025 }
 0x21f   : > { %v1023_v50 = vpop.permute.xlu0 %1022  ;;  %vm1034_vm11 = vcmp.eq.s32.totalorder %v1026_v53, 1 }
 0x220   : > { %vm1033_vm10 = vcmp.eq.s32.totalorder %v1023_v50, 1 }
 0x264   : > { %v948_v24 = vpop.f32.mrb[0].mxu1 }
 0x265   : > { %v950_v25 = vpop.f32.mrb[1].mxu1 }
 0x266   : > { %v1035_v26 = vsel %vm1027_vm4, %v948_v24, %v950_v25  ;;  %v952_v27 = vpop.f32.mrb[2].mxu1 }
 0x267   : > { %v954_v28 = vpop.f32.mrb[3].mxu1 }
 0x268   : > { %v1036_v29 = vsel %vm1028_vm5, %v952_v27, %v954_v28 }
 0x26c   : > { %v958_v32 = vpop.f32.mrb[4].mxu1 }
 0x26d   : > { %v960_v35 = vpop.f32.mrb[5].mxu1 }
 0x26e   : > { %v1037_v36 = vsel %vm1029_vm6, %v958_v32, %v960_v35  ;;  %v962_v37 = vpop.f32.mrb[6].mxu1 }
 0x26f   : > { %v964_v38 = vpop.f32.mrb[7].mxu1 }
 0x270   : > { %v1038_v39 = vsel %vm1030_vm7, %v962_v37, %v964_v38 }
 0x274   : > { %v968_v44 = vpop.f32.mrb[8].mxu1 }
 0x275   : > { %v970_v45 = vpop.f32.mrb[9].mxu1 }
 0x276   : > { %v1039_v46 = vsel %vm1031_vm8, %v968_v44, %v970_v45  ;;  %v972_v47 = vpop.f32.mrb[10].mxu1 }
 0x277   : > { %v974_v48 = vpop.f32.mrb[11].mxu1 }
 0x278   : > { %v1040_v49 = vsel %vm1032_vm9, %v972_v47, %v974_v48 }
 0x27a   : > { %v1360_v63 = vpop.f32.mrb[0].mxu0 }
 0x27b   : > { %v1045_v0 = vadd.f32 %v1360_v63, %v2094_v42  ;;  %v775_v1 = vpop.f32.mrb[1].mxu0 }
 0x27c   : > { %v978_v54 = vpop.f32.mrb[12].mxu1  ;;  %v1043_v2 = vadd.f32 %v2078_v33, %v775_v1  ;;  %v1361_v3 = vpop.f32.mrb[2].mxu0 }
 0x27d   : > { %v980_v58 = vpop.f32.mrb[13].mxu1  ;;  %v1053_v4 = vadd.f32 %v1045_v0, %v1037_v36  ;;  %v1046_v5 = vadd.f32 %v1361_v3, %v2097_v43  ;;  %v778_v55 = vpop.f32.mrb[3].mxu0 }
 0x27e   : > { %v1041_v59 = vsel %vm1033_vm10, %v978_v54, %v980_v58  ;;  %v982_v60 = vpop.f32.mrb[14].mxu1  ;;  %v1051_v6 = vadd.f32 %v1043_v2, %v1035_v26  ;;  %v1044_v7 = vadd.f32 %v2081_v34, %v778_v55 }
 0x27f   : > { %v984_v61 = vpop.f32.mrb[15].mxu1  ;;  %1061 = vst [vmem:[%s2024_s19 + $0x10] sm:$0xff] %v1053_v4  ;;  %v1054_v8 = vadd.f32 %v1046_v5, %v1038_v39 }
 0x280   : > { %v1042_v62 = vsel %vm1034_vm11, %v982_v60, %v984_v61  ;;  %1059 = vst [vmem:[%s2024_s19] sm:$0xff] %v1051_v6  ;;  %v1052_v9 = vadd.f32 %v1044_v7, %v1036_v29 }
 0x281   : > { %1062 = vst [vmem:[%s2024_s19 + $0x18] sm:$0xff] %v1054_v8 }
 0x282   : > { %1060 = vst [vmem:[%s2024_s19 + $0x8] sm:$0xff] %v1052_v9 }
 0x2e7   : > { %v1364_v42 = vpop.f32.mrb[4].mxu0 }
 0x2e8   : > { %v1049_v33 = vadd.f32 %v1364_v42, %v2121_v56  ;;  %v791_v10 = vpop.f32.mrb[5].mxu0 }
 0x2e9   : > { %v1047_v43 = vadd.f32 %v2111_v51, %v791_v10  ;;  %v1365_v11 = vpop.f32.mrb[6].mxu0 }
 0x2ea   : > { %v1057_v12 = vadd.f32 %v1049_v33, %v1041_v59  ;;  %v1050_v34 = vadd.f32 %v1365_v11, %v2124_v57  ;;  %v794_v13 = vpop.f32.mrb[7].mxu0 }
 0x2eb   : > { %v1055_v14 = vadd.f32 %v1047_v43, %v1039_v46  ;;  %v1048_v15 = vadd.f32 %v2114_v52, %v794_v13 }
 0x2ec   : > { %1065 = vst [vmem:[%s2024_s19 + $0x30] sm:$0xff] %v1057_v12  ;;  %v1058_v16 = vadd.f32 %v1050_v34, %v1042_v62 }
 0x2ed   : > { %1063 = vst [vmem:[%s2024_s19 + $0x20] sm:$0xff] %v1055_v14  ;;  %v1056_v17 = vadd.f32 %v1048_v15, %v1040_v49 }
 0x2ee   : > { %1066 = vst [vmem:[%s2024_s19 + $0x38] sm:$0xff] %v1058_v16 }
 0x2ef   : > { %1064 = vst [vmem:[%s2024_s19 + $0x28] sm:$0xff] %v1056_v17 }
 0x2f0 PF: > { %s1293_s5 = sshll.u32 %s1724_s25, 10  ;;  %s2247_s6 = sld [smem:[#allocation19_spill]] }
 0x2f1   : > { %s1081_s9 = sshll.u32 %s2024_s19, 4  ;;  %s1068_s17 = scalar_lea.sflag [#allocation5], %s1990_s10  ;;  %s2151_s9 = int_to_ptr.vmem [resolvable:$true] %s1081_s9 }
 0x2f2   : > { %s1634_s15 = scalar_lea.vmem %s2151_s9, 1024  ;;  %s1748_s14 = smov [#allocation9]  }
 0x2f3   : > { %p1635_p3 = scmp.ne.s32.totalorder %s2151_s9, %s1634_s15  ;;  %s1638_s7 = sshll.u32 %s1748_s14, 4  ;;  %s1639_s7 = int_to_ptr.vmem [resolvable:$false] %s1638_s7 }
 0x2f4   : > { %s1640_s25 = scalar_lea.vmem %s1639_s7, 2048  ;;  %p1641_p11 = scmp.lt.s32.totalorder %s2151_s9, %s1639_s7 }
 0x2f5   : > { %p1636_p7 = pnand %p1635_p3, %p1929_p6  ;;  %p1642_p1 = scmp.lt.s32.totalorder %s1640_s25, %s1634_s15 }
 0x2f6   : > { %s2148_s21 = scalar_lea.hbm %s2247_s6, %s1293_s5 }
 0x2f7   : > { %p1637_p12 = pneg %p1636_p7  ;;  %p1643_p5 = por %p1642_p1, %p1641_p11 }
 0x2f9   : > { %p1644_p9 = pnand %p1643_p5, %p1637_p12 }
 0x2fb   : > { %1647 = shalt.err (!%p1644_p9)
}
 0x2fc   : > { %s1648_s19 = scalar_lea.hbm %s2148_s21, 1024  ;;  %s1652_s13 = scalar_lea.hbm %s2247_s6, 2048 }
 0x2fd   : > { %p1649_p0 = scmp.ne.s32.totalorder %s2148_s21, %s1648_s19  ;;  %p1653_p10 = scmp.lt.u32.totalorder %s2148_s21, %s2247_s6 }
 0x2fe   : > { %p1654_p8 = scmp.lt.u32.totalorder %s1652_s13, %s1648_s19  ;;  %p1656_p3 = scmp.lt.u32.totalorder %s1648_s19, %s2148_s21 }
 0x2ff   : > { %p1650_p2 = pnand %p1649_p0, %p1929_p6 }
 0x300   : > { %p1655_p13 = por %p1654_p8, %p1653_p10 }
 0x301   : > { %p1651_p4 = pneg %p1650_p2 }
 0x302   : > { %p1657_p7 = por %p1656_p3, %p1655_p13 }
 0x304   : > { %p1658_p12 = pnand %p1657_p7, %p1651_p4 }
 0x306   : > { %1661 = shalt.err (!%p1658_p12)
}
 0x307   : > { %s1749_s8 = smov 128   ;;  %s1750_s11 = smov 8  }
 0x308   : > { %1392 = dma.vmem_to_hbm [thread:$0]  (%p1929_p6), %s2151_s9, 1024, %s2148_s21, %s1068_s17, %s1749_s8, %s1749_s8, %s1750_s11  }
 0x309 PF: > { %s2248_s5 = sld [smem:[#allocation13_spill]]  ;;  %s2249_s24 = sld [smem:[#allocation14_spill]] }
 0x30a   : > { %p1414_p11 = scmp.ge.s32.totalorder %s1736_s28, 2 }
 0x30f   : > { %s1096_s16 = sand.u32 1, %s2248_s5   ;;  %p2250_p1 = scmp.ne.s32.totalorder %s2249_s24, 0 }
 0x310   : > { %s1097_s15 = scalar_lea.sflag [#allocation5], %s1096_s16 }
 0x311   : > { %p1406_p5 = pnand %p1414_p11, %p2250_p1 }
 0x313   : > { %1703 = dma.done.wait (!%p1406_p5), %s1097_s15, 1024  }
 0x314   : > { %1705 = vsyncadd (!%p1406_p5), %s1097_s15, 4294966272  ;;  %s23_s28 = sadd.s32 1, %s1736_s28   ;;  %s2251_s29 = sld [smem:[#allocation15_spill]] }
 0x315   : > { %p20_p9 = scmp.ge.s32.totalorder %s23_s28, 6   ;;  %s2252_s21 = smov %s1712_s22 }
 0x316   : > { %s2253_s22 = smov %s1716_s23  ;;  %s2254_s23 = smov %s1952_s4 }
 0x317   : > { %s2255_s24 = smov %s1728_s26  ;;  %s2256_s25 = smov %s1732_s27 }
 0x318   : > { %s2257_s26 = smov %s2260_s18  ;;  %22 = sbr.rel (!%p20_p9) target bundleno = 13 (0xd), region = 114 }
 0x31a   : > { %s2258_s27 = smov %s2251_s29 }
 0x31f   :  { %1102 = vsyncpa [#allocation4], 1 }
 0x320   :  { %1104 = vsyncpa [#allocation4 + $0x1], 1 }
 0x321   :  { %1105 = vsyncpa [#allocation7], 1 }
 0x322   :  { %1106 = vsyncpa [#allocation5], 1 }
 0x323   :  { %1108 = vsyncpa [#allocation5 + $0x1], 1 }

</bundles_post_ra>
